<compile_context>
chip_gen: v5e
topology: v5e:2x2
jax: 0.10.0
libtpu: 0.0.40
codegen_flags: <defaults>
</compile_context>

<pallas_src>
import functools

import jax
import jax.numpy as jnp
from jax.experimental import pallas as pl
from jax.experimental.pallas import tpu as pltpu


def _round_up(x, m):
    return ((x + m - 1) // m) * m


def _generator_kernel(x_ref, w_ref, b_ref, o_ref, m_sc, l_sc, *,
                      vocab, tile_vocab, mask_cols):
    # Grid = (row_tiles, 2 phases, vocab_tiles); vocab axis is innermost so,
    # for each row tile, all phase-0 (LSE) steps run before any phase-1 step.
    p = pl.program_id(1)
    j = pl.program_id(2)

    # (TM, d_model) x (TV, d_model) -> (TM, TV): contract the shared d_model
    # axis directly; the weight keeps its PyTorch [vocab, d_model] layout.
    logits = jax.lax.dot_general(
        x_ref[...], w_ref[...],
        dimension_numbers=(((1,), (1,)), ((), ())),
        preferred_element_type=jnp.float32,
    ) + b_ref[...]

    if mask_cols:
        col = jax.lax.broadcasted_iota(jnp.int32, logits.shape, 1) + j * tile_vocab
        # Padded vocab columns become -inf: exp() of them is exactly 0 in the
        # LSE phase, and they are sliced off in the wrapper anyway.
        logits = jnp.where(col < vocab, logits, -jnp.inf)

    @pl.when(jnp.logical_and(p == 0, j == 0))
    def _():
        m_sc[...] = jnp.full_like(m_sc, -jnp.inf)
        l_sc[...] = jnp.zeros_like(l_sc)

    @pl.when(p == 0)
    def _():
        # Online (running) max / sum-exp over the vocab tiles.  No o_ref
        # store: the out block index is pinned to (i, 0) while p == 0, so no
        # HBM writeback happens during this phase.
        m_prev = m_sc[...]
        m_new = jnp.maximum(m_prev, jnp.max(logits, axis=-1, keepdims=True))
        e = jnp.exp(logits - m_new)
        l_sc[...] = l_sc[...] * jnp.exp(m_prev - m_new) + jnp.sum(
            e, axis=-1, keepdims=True)
        m_sc[...] = m_new

    @pl.when(p == 1)
    def _():
        lse = m_sc[...] + jnp.log(l_sc[...])
        o_ref[...] = (logits - lse).astype(o_ref.dtype)


def _pick_config(d_model, vocab, tile_rows, tile_vocab, compute_dtype):
    """Generation-gated tile sizes + VMEM limit, shrunk to fit the budget."""
    try:
        vmem_cap = int(pltpu.get_tpu_info().vmem_capacity_bytes)
    except Exception:
        vmem_cap = 64 * 1024 * 1024          # assume smallest (v7x / unknown)
    if vmem_cap >= 128 * 1024 * 1024:        # v5e / v6e: 128 MiB VMEM
        def_rows, def_vocab, vmem_limit = 1024, 4096, 100 * 1024 * 1024
    else:                                    # v7x: 64 MiB per TensorCore
        def_rows, def_vocab, vmem_limit = 1024, 2048, 48 * 1024 * 1024

    tm = def_rows if tile_rows is None else tile_rows
    tv = def_vocab if tile_vocab is None else tile_vocab
    tm = max(8, _round_up(tm, 8))
    tv = max(128, _round_up(min(tv, _round_up(vocab, 128)), 128))

    cb = jnp.dtype(compute_dtype).itemsize

    def footprint(tm_, tv_):
        return (2 * tm_ * d_model * cb        # x tile   (double-buffered)
                + 2 * tv_ * d_model * cb      # weight tile
                + 2 * tm_ * tv_ * 4           # output tile (f32 worst case)
                + 2 * tv_ * 4                 # bias tile
                + 2 * tm_ * 8)                # m / l scratch

    budget = (vmem_limit * 9) // 10
    while footprint(tm, tv) > budget and tv > 128:
        tv = max(128, _round_up(tv // 2, 128))
    while footprint(tm, tv) > budget and tm > 8:
        tm = max(8, _round_up(tm // 2, 8))
    return tm, tv, vmem_limit


def make_generator(weight, bias, *, tile_rows=None, tile_vocab=None,
                   compute_dtype=jnp.bfloat16, out_dtype=jnp.float32):
    """Build forward(x) = log_softmax(x @ weight.T + bias, axis=-1).

    weight: [vocab, d_model] (nn.Linear layout); bias: [vocab].  The weight
    cast/pad is hoisted here (done once, not per forward call).
    """
    vocab, d_model = weight.shape
    tm_target, tv, vmem_limit = _pick_config(d_model, vocab, tile_rows,
                                             tile_vocab, compute_dtype)
    vocab_pad = _round_up(vocab, tv)
    mask_cols = vocab_pad != vocab

    w = weight.astype(compute_dtype)                 # stays [vocab, d_model]
    b2d = bias.astype(jnp.float32).reshape(1, vocab)
    if mask_cols:
        w = jnp.pad(w, ((0, vocab_pad - vocab), (0, 0)))
        b2d = jnp.pad(b2d, ((0, 0), (0, vocab_pad - vocab)))

    kernel = functools.partial(_generator_kernel, vocab=vocab, tile_vocab=tv,
                               mask_cols=mask_cols)

    def forward(x):
        batch, seq, dmx = x.shape
        assert dmx == d_model, "x last dim must equal d_model"
        n = batch * seq

        # Row tile: multiple of 8, clamped to N, capped so the parallel row
        # axis has >= 2 tiles (both TensorCores get work) whenever N > 8.
        tm = min(tm_target, _round_up(n, 8))
        if n > 8:
            tm = min(tm, _round_up(-(-n // 2), 8))
        tm = max(8, _round_up(tm, 8))
        n_pad = _round_up(n, tm)

        x2d = x.reshape(n, d_model).astype(compute_dtype)
        if n_pad != n:
            x2d = jnp.pad(x2d, ((0, n_pad - n), (0, 0)))

        grid = (n_pad // tm, 2, vocab_pad // tv)

        out = pl.pallas_call(
            kernel,
            out_shape=jax.ShapeDtypeStruct((n_pad, vocab_pad), out_dtype),
            grid_spec=pltpu.PrefetchScalarGridSpec(
                num_scalar_prefetch=0,
                grid=grid,
                in_specs=[
                    # x tile: constant across phase/vocab axes -> resident.
                    pl.BlockSpec((tm, d_model), lambda i, p, j: (i, 0)),
                    # weight slab of the [vocab, d_model] matrix.
                    pl.BlockSpec((tv, d_model), lambda i, p, j: (j, 0)),
                    # bias tile.
                    pl.BlockSpec((1, tv), lambda i, p, j: (0, j)),
                ],
                # Phase 0 pins the out block at (i, 0): the index does not
                # change during the LSE phase, so no throwaway writeback; the
                # same block is then fully overwritten at (p=1, j=0) before
                # its first (and only) HBM writeback.
                out_specs=pl.BlockSpec((tm, tv), lambda i, p, j: (i, p * j)),
                scratch_shapes=[
                    pltpu.VMEM((tm, 1), jnp.float32),   # running max
                    pltpu.VMEM((tm, 1), jnp.float32),   # running sum-exp
                ],
            ),
            compiler_params=pltpu.CompilerParams(
                # Row axis megacore-parallel; phase + vocab axes carry the
                # resident scratch / output state.
                dimension_semantics=("parallel", "arbitrary", "arbitrary"),
                vmem_limit_bytes=vmem_limit,
            ),
        )(x2d, w, b2d)

        if n_pad != n or vocab_pad != vocab:
            out = out[:n, :vocab]
        return out.reshape(batch, seq, vocab)

    return forward


def generator_forward(x, weight, bias, **kwargs):
    """One-shot convenience wrapper (param prep + forward in one call)."""
    return make_generator(weight, bias, **kwargs)(x)


if __name__ == "__main__":
    key = jax.random.PRNGKey(0)
    kx, kw, kb = jax.random.split(key, 3)

    batch, seq, d_model, vocab = 2, 8, 64, 512
    x = jax.random.normal(kx, (batch, seq, d_model), dtype=jnp.float32)
    weight = jax.random.normal(kw, (vocab, d_model), dtype=jnp.float32) * 0.02
    bias = jax.random.normal(kb, (vocab,), dtype=jnp.float32) * 0.02

    # Check 1: f32 operands, small tiles to exercise the multi-tile grid
    # (2 row tiles x 2 phases x 4 vocab tiles) against a tight-tolerance ref.
    out = generator_forward(x, weight, bias, tile_rows=8, tile_vocab=128,
                            compute_dtype=jnp.float32)
    out = jax.block_until_ready(out)
    ref = jax.nn.log_softmax(x @ weight.T + bias, axis=-1)
    assert out.shape == (batch, seq, vocab)
    assert jnp.allclose(out, ref, atol=1e-5, rtol=1e-5), "f32 mismatch vs reference"

    # Check 2: default bf16 operand path + ragged vocab (500 -> padded 512,
    # masked last tile) via the hoisted-params factory.
    vocab2 = 500
    w2, b2 = weight[:vocab2], bias[:vocab2]
    fwd2 = make_generator(w2, b2, tile_vocab=128)
    out2 = jax.block_until_ready(fwd2(x))
    xr = x.astype(jnp.bfloat16).astype(jnp.float32)
    wr = w2.astype(jnp.bfloat16).astype(jnp.float32)
    ref2 = jax.nn.log_softmax(xr @ wr.T + b2, axis=-1)
    assert out2.shape == (batch, seq, vocab2)
    assert jnp.allclose(out2, ref2, atol=2e-3, rtol=2e-3), "bf16 mismatch vs reference"

    print("KERNEL_OK")
</pallas_src>

<mosaic_0001>
module attributes {stable_mosaic.version = 11 : i64} {
  func.func @_generator_kernel(%arg0: i32, %arg1: i32, %arg2: i32, %arg3: memref<8x64xf32, #tpu.memory_space<vmem>>, %arg4: memref<128x64xf32, #tpu.memory_space<vmem>>, %arg5: memref<1x128xf32, #tpu.memory_space<vmem>>, %arg6: memref<8x128xf32, #tpu.memory_space<vmem>>, %arg7: memref<8x1xf32, #tpu.memory_space<vmem>>, %arg8: memref<8x1xf32, #tpu.memory_space<vmem>>) attributes {dimension_semantics = [#tpu.dimension_semantics<parallel>, #tpu.dimension_semantics<arbitrary>, #tpu.dimension_semantics<arbitrary>], iteration_bounds = array<i64: 2, 2, 4>, scalar_prefetch = 0 : i64, scratch_operands = 2 : i64, tpu.core_type = #tpu.core_type<tc>, window_params = [{transform_indices = @transform_0, window_bounds = array<i64: 8, 64>}, {transform_indices = @transform_1, window_bounds = array<i64: 128, 64>}, {transform_indices = @transform_2, window_bounds = array<i64: 1, 128>}, {transform_indices = @transform_3, window_bounds = array<i64: 8, 128>}]} {
    %c0 = arith.constant 0 : index
    %c0_0 = arith.constant 0 : index
    %0 = vector.load %arg3[%c0, %c0_0] : memref<8x64xf32, #tpu.memory_space<vmem>>, vector<8x64xf32>
    %c0_1 = arith.constant 0 : index
    %c0_2 = arith.constant 0 : index
    %1 = vector.load %arg4[%c0_1, %c0_2] : memref<128x64xf32, #tpu.memory_space<vmem>>, vector<128x64xf32>
    %cst = arith.constant dense<0.000000e+00> : vector<8x128xf32>
    %2 = tpu.matmul %0, %1, %cst {dimension_numbers = #tpu.dot_dimension_numbers<[1], [1], [0], [0], [0, 0, 1, 0], [], []>} : vector<8x64xf32>, vector<128x64xf32>, vector<8x128xf32> -> vector<8x128xf32>
    %c0_3 = arith.constant 0 : index
    %c0_4 = arith.constant 0 : index
    %3 = vector.load %arg5[%c0_3, %c0_4] : memref<1x128xf32, #tpu.memory_space<vmem>>, vector<1x128xf32>
    %4 = vector.broadcast %3 : vector<1x128xf32> to vector<8x128xf32>
    %5 = arith.addf %2, %4 : vector<8x128xf32>
    %c0_i32 = arith.constant 0 : i32
    %6 = arith.cmpi eq, %arg1, %c0_i32 : i32
    %c0_i32_5 = arith.constant 0 : i32
    %7 = arith.cmpi eq, %arg2, %c0_i32_5 : i32
    %8 = arith.andi %6, %7 : i1
    %9 = arith.extui %8 : i1 to i32
    %c0_i32_6 = arith.constant 0 : i32
    %10 = arith.cmpi ne, %9, %c0_i32_6 : i32
    scf.if %10 {
      %cst_10 = arith.constant 0xFF800000 : f32
      %17 = vector.broadcast %cst_10 : f32 to vector<8x1xf32>
      %c0_11 = arith.constant 0 : index
      %c0_12 = arith.constant 0 : index
      %18 = vector.load %arg7[%c0_11, %c0_12] : memref<8x1xf32, #tpu.memory_space<vmem>>, vector<8x1xf32>
      tpu.vector_store %arg7[%c0_11, %c0_12], %17 {strides = array<i32>} : memref<8x1xf32, #tpu.memory_space<vmem>>, vector<8x1xf32>,
      %cst_13 = arith.constant 0.000000e+00 : f32
      %19 = vector.broadcast %cst_13 : f32 to vector<8x1xf32>
      %c0_14 = arith.constant 0 : index
      %c0_15 = arith.constant 0 : index
      %20 = vector.load %arg8[%c0_14, %c0_15] : memref<8x1xf32, #tpu.memory_space<vmem>>, vector<8x1xf32>
      tpu.vector_store %arg8[%c0_14, %c0_15], %19 {strides = array<i32>} : memref<8x1xf32, #tpu.memory_space<vmem>>, vector<8x1xf32>,
    } else {
    }
    %c0_i32_7 = arith.constant 0 : i32
    %11 = arith.cmpi eq, %arg1, %c0_i32_7 : i32
    %12 = arith.extui %11 : i1 to i32
    %c0_i32_8 = arith.constant 0 : i32
    %13 = arith.cmpi ne, %12, %c0_i32_8 : i32
    scf.if %13 {
      %c0_10 = arith.constant 0 : index
      %c0_11 = arith.constant 0 : index
      %17 = vector.load %arg7[%c0_10, %c0_11] : memref<8x1xf32, #tpu.memory_space<vmem>>, vector<8x1xf32>
      %cst_12 = arith.constant dense<0xFF800000> : vector<8xf32>
      %18 = vector.multi_reduction <maximumf>, %5, %cst_12 [1] : vector<8x128xf32> to vector<8xf32>
      %19 = vector.shape_cast %18 : vector<8xf32> to vector<8x1xf32>
      %20 = arith.maximumf %17, %19 : vector<8x1xf32>
      %21 = vector.broadcast %20 : vector<8x1xf32> to vector<8x128xf32>
      %22 = arith.subf %5, %21 : vector<8x128xf32>
      %23 = math.exp %22 : vector<8x128xf32>
      %c0_13 = arith.constant 0 : index
      %c0_14 = arith.constant 0 : index
      %24 = vector.load %arg8[%c0_13, %c0_14] : memref<8x1xf32, #tpu.memory_space<vmem>>, vector<8x1xf32>
      %25 = arith.subf %17, %20 : vector<8x1xf32>
      %26 = math.exp %25 : vector<8x1xf32>
      %27 = arith.mulf %24, %26 : vector<8x1xf32>
      %cst_15 = arith.constant dense<0.000000e+00> : vector<8xf32>
      %28 = vector.multi_reduction <add>, %23, %cst_15 [1] : vector<8x128xf32> to vector<8xf32>
      %29 = vector.shape_cast %28 : vector<8xf32> to vector<8x1xf32>
      %30 = arith.addf %27, %29 : vector<8x1xf32>
      %c0_16 = arith.constant 0 : index
      %c0_17 = arith.constant 0 : index
      %31 = vector.load %arg8[%c0_16, %c0_17] : memref<8x1xf32, #tpu.memory_space<vmem>>, vector<8x1xf32>
      tpu.vector_store %arg8[%c0_16, %c0_17], %30 {strides = array<i32>} : memref<8x1xf32, #tpu.memory_space<vmem>>, vector<8x1xf32>,
      %c0_18 = arith.constant 0 : index
      %c0_19 = arith.constant 0 : index
      %32 = vector.load %arg7[%c0_18, %c0_19] : memref<8x1xf32, #tpu.memory_space<vmem>>, vector<8x1xf32>
      tpu.vector_store %arg7[%c0_18, %c0_19], %20 {strides = array<i32>} : memref<8x1xf32, #tpu.memory_space<vmem>>, vector<8x1xf32>,
    } else {
    }
    %c1_i32 = arith.constant 1 : i32
    %14 = arith.cmpi eq, %arg1, %c1_i32 : i32
    %15 = arith.extui %14 : i1 to i32
    %c0_i32_9 = arith.constant 0 : i32
    %16 = arith.cmpi ne, %15, %c0_i32_9 : i32
    scf.if %16 {
      %c0_10 = arith.constant 0 : index
      %c0_11 = arith.constant 0 : index
      %17 = vector.load %arg7[%c0_10, %c0_11] : memref<8x1xf32, #tpu.memory_space<vmem>>, vector<8x1xf32>
      %c0_12 = arith.constant 0 : index
      %c0_13 = arith.constant 0 : index
      %18 = vector.load %arg8[%c0_12, %c0_13] : memref<8x1xf32, #tpu.memory_space<vmem>>, vector<8x1xf32>
      %19 = math.log %18 : vector<8x1xf32>
      %20 = arith.addf %17, %19 : vector<8x1xf32>
      %21 = vector.broadcast %20 : vector<8x1xf32> to vector<8x128xf32>
      %22 = arith.subf %5, %21 : vector<8x128xf32>
      %c0_14 = arith.constant 0 : index
      %c0_15 = arith.constant 0 : index
      %23 = vector.load %arg6[%c0_14, %c0_15] : memref<8x128xf32, #tpu.memory_space<vmem>>, vector<8x128xf32>
      tpu.vector_store %arg6[%c0_14, %c0_15], %22 {strides = array<i32>} : memref<8x128xf32, #tpu.memory_space<vmem>>, vector<8x128xf32>,
    } else {
    }
    return
  }
  func.func @transform_0(%arg0: i32, %arg1: i32, %arg2: i32) -> (i32, i32) {
    %c0_i32 = arith.constant 0 : i32
    %c0_i32_0 = arith.constant 0 : i32
    return %arg0, %c0_i32 : i32, i32
  }
  func.func @transform_1(%arg0: i32, %arg1: i32, %arg2: i32) -> (i32, i32) {
    %c0_i32 = arith.constant 0 : i32
    %c0_i32_0 = arith.constant 0 : i32
    return %arg2, %c0_i32 : i32, i32
  }
  func.func @transform_2(%arg0: i32, %arg1: i32, %arg2: i32) -> (i32, i32) {
    %c0_i32 = arith.constant 0 : i32
    %c0_i32_0 = arith.constant 0 : i32
    return %c0_i32, %arg2 : i32, i32
  }
  func.func @transform_3(%arg0: i32, %arg1: i32, %arg2: i32) -> (i32, i32) {
    %0 = arith.muli %arg1, %arg2 : i32
    %c0_i32 = arith.constant 0 : i32
    return %arg0, %0 : i32, i32
  }
}

</mosaic_0001>

<bundles_post_ra>
// kernel: tpu_custom_call.1
= control target key start
LH: loop header
LB: loop body
LE: loop exit
PB: predicated region body
PF: predicated region fallthrough
CT: control target
= control target key end

     0   :  { %s969_s0 = inlined_call_operand.vmem [shape: f32[16,64], index: 0, kind: input, shape index: {}]   ;;  %s970_s1 = inlined_call_operand.vmem [shape: f32[512,64], index: 1, kind: input, shape index: {}]   ;;  %s971_s2 = inlined_call_operand.vmem [shape: f32[1,512], index: 2, kind: input, shape index: {}]   ;;  %s972_s3 = inlined_call_operand.hbm [shape: f32[16,512], index: 3, kind: output, shape index: {}]  }
   0x1   :  { %975 = sst [smem:[#allocation8_spill]] %s969_s0 }
   0x2   :  { %976 = sst [smem:[#allocation9_spill]] %s970_s1 }
   0x3   :  { %977 = sst [smem:[#allocation10_spill]] %s971_s2 }
   0x4   :  { %8 = vsyncpa [#allocation5], 0 }
   0x5   :  { %10 = vsyncpa [#allocation5 + $0x1], 0  ;;  %s757_s12 = smov 0   ;;  %s759_s13 = smov 0  }
   0x6   :  { %s761_s14 = smov 0   ;;  %s763_s15 = smov 0  }
   0x7   :  { %s765_s16 = smov 0   ;;  %s767_s17 = smov 0  }
   0x8   :  { %s769_s18 = smov 0   ;;  %s771_s19 = smov 0  }
   0x9   :  { %s773_s20 = smov 0   ;;  %s775_s21 = smov 0  }
   0xa LB: > { %s488_s22 = sadd.s32 4294967295, %s731_s21   ;;  %s489_s23 = sadd.s32 4294967294, %s731_s21   ;;  %s731_s21 = sphi %s775_s21, %s16_s21   ;;  %s727_s20 = sphi %s773_s20, %s994_s20   ;;  %s723_s19 = sphi %s771_s19, %s993_s19   ;;  %s719_s18 = sphi %s769_s18, %s992_s18   ;;  %s715_s17 = sphi %s767_s17, %s991_s17   ;;  %s711_s16 = sphi %s765_s16, %s990_s16   ;;  %s707_s15 = sphi %s763_s15, %s989_s15   ;;  %s703_s14 = sphi %s761_s14, %s988_s14   ;;  %s699_s13 = sphi %s759_s13, %s987_s13   ;;  %s695_s12 = sphi %s757_s12, %s986_s12  }
   0xb   : > { %s28_s24 = sadd.s32 1, %s719_s18  ;;  %s31_s25 = sadd.s32 1, %s723_s19 }
   0xc   : > { %p29_p0 = scmp.ge.s32.totalorder %s28_s24, 4  ;;  %s35_s26 = sadd.s32 1, %s727_s20 }
   0xd   : > { %s117_s27 = smul.u32 %s719_s18, %s723_s19  ;;  %p134_p1 = scmp.ne.s32.totalorder %s703_s14, %s699_s13 }
   0xe   : > { %s996_s24 = smov (%p29_p0, %s28_s24), 0  ;;  %s998_s25 = smov (!%p29_p0, %s31_s25), %s723_s19 }
   0xf   : > { %p135_p2 = scmp.eq.s32.totalorder %s488_s22, 15  ;;  %p33_p3 = scmp.ge.s32.totalorder %s998_s25, 2 }
  0x10   : > { %p140_p4 = scmp.ne.s32.totalorder %s699_s13, %s695_s12  ;;  %p141_p6 = scmp.eq.s32.totalorder %s489_s23, 15 }
  0x11   : > { %p821_p5 = por %p135_p2, %p134_p1  ;;  %s1000_s25 = smov (%p33_p3, %s998_s25), 0 }
  0x12   : > { %s1002_s26 = smov (!%p33_p3, %s35_s26), %s727_s20  ;;  %s118_s29 = smul.u32 %s1000_s25, %s996_s24 }
  0x13   : > { %p830_p7 = por %p141_p6, %p140_p4  ;;  %p37_p8 = scmp.ge.s32.totalorder %s1002_s26, 2 }
  0x14   : > { %p492_p9 = scmp.ge.s32.totalorder %s731_s21, 1  ;;  %s120_s4 = ssub.s32 %s117_s27, %s118_s29 }
  0x15   : > { %p181_p10 = scmp.lt.s32.totalorder %s731_s21, 17  ;;  %s1004_s26 = smov (%p37_p8, %s1002_s26), 0 }
  0x16   : > { %980 = sst [smem:[#allocation7_spill]] %s1004_s26  ;;  %s119_s5 = ssub.s32 %s727_s20, %s1004_s26 }
  0x17   : > { %p182_p11 = pnand %p492_p9, %p181_p10  ;;  %s121_s6 = sor.u32 %s120_s4, %s119_s5 }
  0x18   : > { %s124_s7 = sadd.s32 1, %s703_s14  ;;  %p122_p12 = scmp.eq.s32.totalorder %s121_s6, 0 }
  0x19   : > { %185 = sbr.rel (%p182_p11) target bundleno = 755 (0x2f3), region = 32  ;;  %s973_s9 = sand.u32 (!%p182_p11), 1, %s699_s13  }
  0x1a   : > { %s842_s8 = scalar_select %p122_p12, %s703_s14, %s124_s7  }
  0x1b   : > { %s495_s10 = sshll.u32 (!%p182_p11), %s707_s15, 4  ;;  %s848_s11 = sshll.u32 (!%p182_p11), %s973_s9, 3 }
  0x1c   : > { %p217_p13 = scmp.lt.s32.totalorder (!%p182_p11), %s495_s10, 63  ;;  %p222_p0 = scmp.lt.s32.totalorder (!%p182_p11), %s707_s15, 3 }
  0x1d   : > { %s981_s1 = sld [smem:[#allocation9_spill]] (!%p182_p11)  ;;  %p212_p1 = scmp.lt.s32.totalorder (!%p182_p11), %s715_s17, 1 }
  0x1e   : > { %s1006_s10 = smov (!%p217_p13, %s495_s10), 63  ;;  %vm247_vm0 = vcmask 523264   ;;  %s982_s2 = sld [smem:[#allocation10_spill]] }
  0x1f   : > { %s496_s22 = sshll.u32 %s1006_s10, 3  ;;  %s983_s0 = sld [smem:[#allocation8_spill]] }
  0x20   : > { %s859_s4 = scalar_select %p222_p0, %s707_s15, 3 }
  0x21   : > { %s213_s10 = scalar_select %p212_p1, %s715_s17, 1 }
  0x22   : > { %p319_p2 = scmp.eq.s32.totalorder %s711_s16, 0  ;;  %p320_p3 = scmp.eq.s32.totalorder %s707_s15, 0 }
  0x23   : > { %s854_s29 = scalar_lea.vmem %s981_s1, %s496_s22  ;;  %s494_s22 = sshll.u32 %s213_s10, 3 }
  0x24   : > { %v242_v0 = vld [vmem:[%s854_s29 + $0x78] sm:$0xff]  ;;  %v241_v1 = vld [vmem:[%s854_s29 + $0x70] sm:$0xff]  ;;  %s224_s7 = scalar_lea.vmem %s982_s2, %s859_s4  ;;  %v240_v2 = vld [vmem:[%s854_s29 + $0x68] sm:$0xff]  ;;  %p321_p4 = pnand %p320_p3, %p319_p2 }
  0x25   : > { %497 = vmatpush.xpose.msk.msra.mxu0 %vm247_vm0, %v242_v0  ;;  %v239_v3 = vld [vmem:[%s854_s29 + $0x60] sm:$0xff]  ;;  %v238_v4 = vld [vmem:[%s854_s29 + $0x58] sm:$0xff]  ;;  %v237_v5 = vld [vmem:[%s854_s29 + $0x50] sm:$0xff]  ;;  %s215_s5 = scalar_lea.vmem %s983_s0, %s494_s22 }
  0x26   : > { %v236_v6 = vld [vmem:[%s854_s29 + $0x48] sm:$0xff]  ;;  %v235_v7 = vld [vmem:[%s854_s29 + $0x40] sm:$0xff]  ;;  %v234_v8 = vld [vmem:[%s854_s29 + $0x38] sm:$0xff] }
  0x27   : > { %v233_v9 = vld [vmem:[%s854_s29 + $0x30] sm:$0xff]  ;;  %v232_v10 = vld [vmem:[%s854_s29 + $0x28] sm:$0xff]  ;;  %v231_v11 = vld [vmem:[%s854_s29 + $0x20] sm:$0xff] }
  0x28   : > { %v230_v12 = vld [vmem:[%s854_s29 + $0x18] sm:$0xff]  ;;  %v229_v13 = vld [vmem:[%s854_s29 + $0x10] sm:$0xff]  ;;  %v228_v14 = vld [vmem:[%s854_s29 + $0x8] sm:$0xff] }
  0x29   : > { %498 = vmatpush.xpose.msk.msra.mxu0 %vm247_vm0, %v241_v1  ;;  %v227_v15 = vld [vmem:[%s854_s29] sm:$0xff]  ;;  %s211_s29 = scalar_lea.vmem [#allocation4], %s848_s11 }
  0x2a   : > { %v226_v16 = vld [vmem:[%s215_s5] sm:$0xff] }
  0x2b   : > { %v612_v17 = vld [vmem:[%s224_s7] ss:$0 sm:$0xff] }
  0x2d   : > { %499 = vmatpush.xpose.msk.msra.mxu0 %vm247_vm0, %v240_v2 }
  0x31   : > { %500 = vmatpush.xpose.msk.msra.mxu0 %vm247_vm0, %v239_v3 }
  0x35   : > { %501 = vmatpush.xpose.msk.msra.mxu0 %vm247_vm0, %v238_v4 }
  0x39   : > { %502 = vmatpush.xpose.msk.msra.mxu0 %vm247_vm0, %v237_v5 }
  0x3d   : > { %503 = vmatpush.xpose.msk.msra.mxu0 %vm247_vm0, %v236_v6 }
  0x41   : > { %504 = vmatpush.xpose.msk.msra.mxu0 %vm247_vm0, %v235_v7 }
  0x45   : > { %505 = vmatpush.xpose.msk.msra.mxu0 %vm247_vm0, %v234_v8 }
  0x49   : > { %506 = vmatpush.xpose.msk.msra.mxu0 %vm247_vm0, %v233_v9 }
  0x4d   : > { %507 = vmatpush.xpose.msk.msra.mxu0 %vm247_vm0, %v232_v10 }
  0x51   : > { %508 = vmatpush.xpose.msk.msra.mxu0 %vm247_vm0, %v231_v11 }
  0x55   : > { %509 = vmatpush.xpose.msk.msra.mxu0 %vm247_vm0, %v230_v12 }
  0x59   : > { %510 = vmatpush.xpose.msk.msra.mxu0 %vm247_vm0, %v229_v13 }
  0x5d   : > { %511 = vmatpush.xpose.msk.msra.mxu0 %vm247_vm0, %v228_v14 }
  0x61   : > { %512 = vmatpush.xpose.msk.msra.mxu0 %vm247_vm0, %v227_v15 }
  0x64   : > { %513 = vmatmul.msk.f32.vlgmr.msra.gmra.mxu0 %vm247_vm0, %v226_v16 }
  0xde   : > { %324 = sbr.rel (%p321_p4) target bundleno = 230 (0xe6), region = 36 }
  0xe1   : > { %v316_v18 = vpop.f32.mrf.mxu0 }
  0xe2   : > { %v317_v19 = vadd.f32 %v612_v17, %v316_v18 }
  0xe3   : > { %vm325_vm1 = vcmask 7168   ;;  %v733_v20 = vmov -inf   ;;  %v734_v21 = vmov 0.0  }
  0xe4   : > { %326 = vst.msk [vmem:[#allocation2] sm:$0xff] %vm325_vm1, %v733_v20 }
  0xe5   : > { %327 = vst.msk [vmem:[#allocation3] sm:$0xff] %vm325_vm1, %v734_v21 }
  0xe6 PF: > { %p514_p6 = scmp.ne.s32.totalorder %s711_s16, 0 }
  0xe8   : > { %330 = sbr.rel (%p514_p6) target bundleno = 600 (0x258), region = 40 }
  0xed   : > { %332 = vmax.xlane.f32.xlu0 %v317_v19  ;;  %v735_v22 = vmov 0   ;;  %v331_v23 = vld [vmem:[#allocation2] sm:$0xff]  ;;  %vm351_vm2 = vcmask 7168   ;;  %v343_v33 = vld [vmem:[#allocation3] sm:$0xff] }
  0xee   : > { %613 = vset.pattern.permute.xlu0 %v735_v22 }
 0x160   : > { %v333_v24 = vpop.xlane.xlu0 %332 }
 0x161   : > { %v334_v25 = vmax.f32 %v331_v23, %v333_v24 }
 0x163   : > { %v344_v26 = vsub.f32 %v331_v23, %v334_v25  ;;  %353 = vst.msk [vmem:[#allocation2] sm:$0xff] %vm351_vm2, %v334_v25  ;;  %337 = vperm.xlu0 %613, %v334_v25  }
 0x165   : > { %v345_v31 = vmul.f32 1.442695, %v344_v26 }
 0x1d5   : > { %v338_v27 = vpop.permute.xlu0 %337 }
 0x1d6   : > { %v340_v28 = vsub.f32 %v317_v19, %v338_v27 }
 0x1d8   : > { %v341_v29 = vmul.f32 1.442695, %v340_v28 }
 0x1da   : > { %614 = vpow2.f32 %v341_v29 }
 0x1db   : > { %616 = vpow2.f32 %v345_v31 }
 0x1e0   : > { %v615_v30 = vpop.eup %614 }
 0x1e1   : > { %348 = vadd.xlane.f32.xlu1 %v615_v30  ;;  %v617_v32 = vpop.eup %616 }
 0x1e2   : > { %v347_v34 = vmul.f32 %v617_v32, %v343_v33 }
 0x254   : > { %v349_v35 = vpop.xlane.xlu1 %348 }
 0x255   : > { %v350_v36 = vadd.f32 %v349_v35, %v347_v34 }
 0x257   : > { %352 = vst.msk [vmem:[#allocation3] sm:$0xff] %vm351_vm2, %v350_v36 }
 0x258 PF: > { %p515_p8 = scmp.ne.s32.totalorder %s711_s16, 1 }
 0x25a   : > { %357 = sbr.rel (%p515_p8) target bundleno = 737 (0x2e1), region = 44 }
 0x25f   : > { %v359_v37 = vld [vmem:[#allocation3] sm:$0xff]  ;;  %v736_v38 = vmov 0   ;;  %v358_v40 = vld [vmem:[#allocation2] sm:$0xff] }
 0x260   : > { %618 = vset.pattern.permute.xlu0 %v736_v38  ;;  %619 = vlog2.f32 %v359_v37 }
 0x266   : > { %v620_v39 = vpop.eup %619 }
 0x267   : > { %v361_v41 = vmul.f32 0.6931472, %v620_v39 }
 0x269   : > { %v362_v42 = vadd.f32 %v361_v41, %v358_v40 }
 0x26b   : > { %365 = vperm.xlu0 %618, %v362_v42  }
 0x2dd   : > { %v366_v43 = vpop.permute.xlu0 %365 }
 0x2de   : > { %v368_v44 = vsub.f32 %v317_v19, %v366_v43 }
 0x2e0   : > { %369 = vst [vmem:[%s211_s29] sm:$0xff] %v368_v44 }
 0x2e1 PF: > { %s378_s9 = smul.u32 %s707_s15, %s711_s16  ;;  %s517_s4 = sshll.u32 %s715_s17, 2 }
 0x2e2   : > { %s386_s7 = sshll.u32 %s211_s29, 4  ;;  %s984_s0 = sand.u32 1, %s699_s13   ;;  %s387_s7 = int_to_ptr.vmem [resolvable:$true] %s386_s7 }
 0x2e3   : > { %s382_s10 = sadd.s32 %s517_s4, %s378_s9  ;;  %s371_s1 = scalar_lea.sflag [#allocation5], %s984_s0 }
 0x2e4   : > { %s518_s22 = sshll.u32 %s382_s10, 3  ;;  %s641_s17 = scalar_lea.hbm %s972_s3, 64 }
 0x2e5   : > { %s384_s5 = scalar_lea.hbm %s972_s3, %s518_s22 }
 0x2e6   : > { %s388_s6 = sshll.u32 %s384_s5, 4  ;;  %s389_s6 = int_to_ptr.hbm [resolvable:$true] %s388_s6 }
 0x2e7   : > { %s635_s2 = sshra.s32 %s389_s6, 4  ;;  %s636_s2 = int_to_ptr.hbm [resolvable:$true] %s635_s2 }
 0x2e8   : > { %s637_s26 = scalar_lea.hbm %s636_s2, 8  ;;  %p642_p12 = scmp.lt.s32.totalorder %s636_s2, %s972_s3 }
 0x2e9   : > { %p638_p9 = scmp.ne.s32.totalorder %s636_s2, %s637_s26  ;;  %p643_p13 = scmp.lt.s32.totalorder %s641_s17, %s637_s26 }
 0x2eb   : > { %p639_p10 = pnand %p638_p9, %p821_p5  ;;  %p644_p0 = por %p643_p13, %p642_p12 }
 0x2ed   : > { %p640_p11 = pneg %p639_p10 }
 0x2ef   : > { %p645_p1 = pnand %p644_p0, %p640_p11 }
 0x2f1   : > { %648 = shalt.err (!%p645_p1)
}
 0x2f2   : > { %521 = dma.vmem_to_hbm [thread:$0]  (%p821_p5), %s387_s7, 128, %s389_s6, %s371_s1  }
 0x2f3 PF: > { %p527_p2 = scmp.ge.s32.totalorder %s731_s21, 2  ;;  %s400_s0 = sand.u32 1, %s695_s12  }
 0x2f4   : > { %s401_s9 = scalar_lea.sflag [#allocation5], %s400_s0 }
 0x2f5   : > { %p524_p3 = pnand %p527_p2, %p830_p7 }
 0x2f7   : > { %p525_p4 = pneg %p524_p3 }
 0x2f9   : > { %690 = dma.done.wait (%p525_p4), %s401_s9, 128  }
 0x2fa   : > { %692 = vsyncadd (%p525_p4), %s401_s9, 4294967168  ;;  %s16_s21 = sadd.s32 1, %s731_s21   ;;  %s985_s1 = sld [smem:[#allocation7_spill]] }
 0x2fb   : > { %p13_p6 = scmp.ge.s32.totalorder %s16_s21, 18   ;;  %s986_s12 = smov %s699_s13 }
 0x2fc   : > { %s987_s13 = smov %s703_s14  ;;  %s988_s14 = smov %s842_s8 }
 0x2fd   : > { %s989_s15 = smov %s719_s18  ;;  %s990_s16 = smov %s723_s19 }
 0x2fe   : > { %s991_s17 = smov %s727_s20  ;;  %s992_s18 = smov %s996_s24 }
 0x2ff   : > { %s993_s19 = smov %s1000_s25  ;;  %15 = sbr.rel (!%p13_p6) target bundleno = 10 (0xa), region = 85 }
 0x300   : > { %s994_s20 = smov %s985_s1 }
 0x304   :  { %407 = vsyncpa [#allocation5], 1 }
 0x305   :  { %409 = vsyncpa [#allocation5 + $0x1], 1 }

</bundles_post_ra>
